<compile_context>
chip_gen: v7x
topology: tpu7x:2x2x1
jax: 0.10.0
libtpu: 0.0.40
codegen_flags: <defaults>
</compile_context>

<pallas_src>
import jax
import jax.numpy as jnp
from jax.experimental import pallas as pl
from jax.experimental.pallas import tpu as pltpu


# ----------------------------------------------------------------------------
# Pallas smoke-test kernel: identity copy (demonstrates the pallas_call path).
# ----------------------------------------------------------------------------
def _identity_kernel(x_ref, o_ref):
    o_ref[...] = x_ref[...]


_LANE_COLS = 1024  # lane-dense tile width; multiple of 128 -> unmasked stores


def _min_sublanes(dtype) -> int:
    """Minimum sublane tile so sub-32-bit dtypes stay packed."""
    bits = jnp.dtype(dtype).itemsize * 8
    if bits >= 32:
        return 8
    if bits == 16:
        return 16
    return 32  # int8 / fp8


def _vmem_limit_bytes() -> int:
    """Generation-aware scoped-VMEM limit with headroom (works v5e/v6e/v7x)."""
    try:
        cap = int(pltpu.get_tpu_info().vmem_capacity_bytes)
    except Exception:
        cap = 64 << 20  # conservative (v7x physical VMEM per TC)
    # Half of physical VMEM, never more than 32 MiB: explicit on v5e (whose
    # scoped default is only 16 MiB) and safely under v7x's 64 MiB physical.
    return min(cap // 2, 32 << 20)


def _round_up(v: int, m: int) -> int:
    return ((v + m - 1) // m) * m


def pallas_identity(x: jax.Array) -> jax.Array:
    """Tiled identity copy through VMEM for an array of any shape.

    HBM-bandwidth bound. The wrapper reshapes to a lane-dense padded 2-D slab
    so every block is (k*min_sublanes, 1024) — no masked partial stores and no
    ragged-shape VMEM blow-ups — then restores the original shape.
    """
    assert x.size > 0, "pallas_identity expects a non-empty array"
    orig_shape = x.shape
    dtype = x.dtype
    n = x.size
    itemsize = jnp.dtype(dtype).itemsize
    min_rows = _min_sublanes(dtype)

    # --- lane-dense 2-D layout (contiguous flatten + zero pad; cheap in XLA) --
    cols = _LANE_COLS
    rows = _round_up(max(1, pl.cdiv(n, cols)), min_rows)
    padded = rows * cols
    flat = jnp.ravel(x)
    if padded != n:
        flat = jnp.pad(flat, (0, padded - n))
    x2d = flat.reshape(rows, cols)

    # --- VMEM-budgeted row tile ----------------------------------------------
    vmem_limit = _vmem_limit_bytes()
    # 2 double-buffered inputs + 2 double-buffered outputs = 4 live tiles;
    # keep them at <= vmem_limit / 2 total.
    tile_budget = max(min_rows * cols * itemsize, vmem_limit // 8)
    tile_rows = max(min_rows, (tile_budget // (cols * itemsize)) // min_rows * min_rows)
    tile_rows = min(tile_rows, rows)
    if rows > min_rows:
        # Guarantee >= 2 row blocks so v7x's second TensorCore gets work.
        half_rows = _round_up((rows + 1) // 2, min_rows)
        tile_rows = max(min_rows, min(tile_rows, half_rows))

    grid = (pl.cdiv(rows, tile_rows),)

    y2d = pl.pallas_call(
        _identity_kernel,
        out_shape=jax.ShapeDtypeStruct((rows, cols), dtype),
        grid=grid,
        in_specs=[pl.BlockSpec((tile_rows, cols), lambda i: (i, 0))],
        out_specs=pl.BlockSpec((tile_rows, cols), lambda i: (i, 0)),
        compiler_params=pltpu.CompilerParams(
            dimension_semantics=("parallel",),
            vmem_limit_bytes=vmem_limit,
        ),
    )(x2d)

    return y2d.reshape(-1)[:n].reshape(orig_shape)


# ----------------------------------------------------------------------------
# FlowEncoder: faithful JAX re-implementation of the (empty) PyTorch module.
# ----------------------------------------------------------------------------
class FlowEncoder:
    def __init__(self):
        # The reference nn.Module registers no parameters / submodules.
        pass

    def __call__(self):
        # Exactly mirrors `def forward(self): return` -> returns None.
        # No kernel launch, no HBM traffic: the fastest no-op is no op.
        return None


if __name__ == "__main__":
    key = jax.random.PRNGKey(0)

    # FlowEncoder forward: no args, returns None, launches nothing.
    encoder = FlowEncoder()
    out = encoder()
    assert out is None, "FlowEncoder.forward must return None"

    # Smoke test 1: small 4-D f32 input (flatten + pad + lane-dense path).
    x_f32 = jax.random.normal(key, (2, 4, 16, 16), dtype=jnp.float32)
    y_f32 = pallas_identity(x_f32)
    jax.block_until_ready(y_f32)
    assert jnp.array_equal(y_f32, x_f32), "f32 identity smoke kernel mismatch"

    # Smoke test 2: bf16 ragged shape -> exercises dtype-aware min tile and
    # the lane-dense padding path (no masked non-128 stores).
    x_bf16 = jax.random.normal(jax.random.PRNGKey(1), (48, 200), dtype=jnp.bfloat16)
    y_bf16 = pallas_identity(x_bf16)
    jax.block_until_ready(y_bf16)
    assert jnp.array_equal(y_bf16, x_bf16), "bf16 identity smoke kernel mismatch"

    # Smoke test 3: larger f32 -> exercises the >=2-row-block grid (v7x sharding).
    x_big = jax.random.normal(jax.random.PRNGKey(2), (256, 512), dtype=jnp.float32)
    y_big = pallas_identity(x_big)
    jax.block_until_ready(y_big)
    assert jnp.array_equal(y_big, x_big), "multi-block identity smoke kernel mismatch"

    print("KERNEL_OK")
</pallas_src>

<mosaic_0001>
module attributes {stable_mosaic.version = 11 : i64} {
  func.func @_identity_kernel(%arg0: i32, %arg1: memref<8x1024xf32, #tpu.memory_space<vmem>>, %arg2: memref<8x1024xf32, #tpu.memory_space<vmem>>) attributes {dimension_semantics = [#tpu.dimension_semantics<parallel>], iteration_bounds = array<i64: 1>, scalar_prefetch = 0 : i64, scratch_operands = 0 : i64, tpu.core_type = #tpu.core_type<tc>, window_params = [{transform_indices = @transform_0, window_bounds = array<i64: 8, 1024>}, {transform_indices = @transform_1, window_bounds = array<i64: 8, 1024>}]} {
    %c0 = arith.constant 0 : index
    %c0_0 = arith.constant 0 : index
    %0 = vector.load %arg1[%c0, %c0_0] : memref<8x1024xf32, #tpu.memory_space<vmem>>, vector<8x1024xf32>
    %c0_1 = arith.constant 0 : index
    %c0_2 = arith.constant 0 : index
    %1 = vector.load %arg2[%c0_1, %c0_2] : memref<8x1024xf32, #tpu.memory_space<vmem>>, vector<8x1024xf32>
    tpu.vector_store %arg2[%c0_1, %c0_2], %0 {strides = array<i32>} : memref<8x1024xf32, #tpu.memory_space<vmem>>, vector<8x1024xf32>,
    return
  }
  func.func @transform_0(%arg0: i32) -> (i32, i32) {
    %c0_i32 = arith.constant 0 : i32
    %c0_i32_0 = arith.constant 0 : i32
    return %arg0, %c0_i32 : i32, i32
  }
  func.func @transform_1(%arg0: i32) -> (i32, i32) {
    %c0_i32 = arith.constant 0 : i32
    %c0_i32_0 = arith.constant 0 : i32
    return %arg0, %c0_i32 : i32, i32
  }
}

</mosaic_0001>

<bundles_post_ra>
// kernel: tpu_custom_call.1
= control target key start
LH: loop header
LB: loop body
LE: loop exit
PB: predicated region body
PF: predicated region fallthrough
CT: control target
= control target key end

     0   :  { %6 = vsyncpa [#allocation3], 0  ;;  %s138_s0 = inlined_call_operand.hbm [shape: f32[8,1024], index: 0, kind: input, shape index: {}]   ;;  %s139_s1 = inlined_call_operand.hbm [shape: f32[8,1024], index: 1, kind: output, shape index: {}]  }
   0x1   :  { %7 = vsyncpa [#allocation4], 0  ;;  %s102_s6 = smov [#allocation2]   ;;  %s54_s10 = scalar_lea.hbm %s138_s0, 1024 }
   0x2   :  { %s14_s7 = sshll.u32 %s102_s6, 4  ;;  %p55_p0 = scmp.ne.s32.totalorder %s138_s0, %s54_s10  ;;  %s15_s7 = int_to_ptr.vmem [resolvable:$true] %s14_s7 }
   0x3   :  { %p58_p1 = scmp.lt.u32.totalorder %s54_s10, %s138_s0 }
   0x5   :  { %p60_p2 = pnand %p58_p1, %p55_p0 }
   0x7   :  { %63 = shalt.err (!%p60_p2)
}
   0x8   :  { %s64_s15 = scalar_lea.vmem %s15_s7, 1024  ;;  %p69_p4 = scmp.lt.s32.totalorder %s15_s7, %s15_s7 }
   0x9   :  { %p65_p3 = scmp.ne.s32.totalorder %s15_s7, %s64_s15  ;;  %p70_p5 = scmp.lt.s32.totalorder %s64_s15, %s64_s15 }
   0xb   :  { %p71_p6 = por %p70_p5, %p69_p4 }
   0xd   :  { %p72_p7 = pnand %p71_p6, %p65_p3 }
   0xf   :  { %75 = shalt.err (!%p72_p7)
}
  0x10   :  { %17 = dma.hbm_to_vmem [thread:$0]  %s138_s0, 1024, %s15_s7, [#allocation3]  }
  0x11   :  { %98 = dma.done.wait [#allocation3], 1024  }
  0x12   :  { %99 = vsyncadd [#allocation3], 4294966272  ;;  %s103_s18 = smov [#allocation5]   ;;  %v21_v0 = vld [vmem:[#allocation2] sm:$0xff]  ;;  %v22_v1 = vld [vmem:[#allocation2 + $0x8] sm:$0xff] }
  0x13   :  { %s43_s19 = sshll.u32 %s103_s18, 4  ;;  %v23_v2 = vld [vmem:[#allocation2 + $0x10] sm:$0xff]  ;;  %29 = vst [vmem:[#allocation5] sm:$0xff] %v21_v0  ;;  %30 = vst [vmem:[#allocation5 + $0x8] sm:$0xff] %v22_v1  ;;  %v24_v3 = vld [vmem:[#allocation2 + $0x18] sm:$0xff]  ;;  %s44_s19 = int_to_ptr.vmem [resolvable:$true] %s43_s19 }
  0x14   :  { %31 = vst [vmem:[#allocation5 + $0x10] sm:$0xff] %v23_v2  ;;  %v25_v4 = vld [vmem:[#allocation2 + $0x20] sm:$0xff]  ;;  %v26_v5 = vld [vmem:[#allocation2 + $0x28] sm:$0xff]  ;;  %32 = vst [vmem:[#allocation5 + $0x18] sm:$0xff] %v24_v3  ;;  %s76_s0 = scalar_lea.vmem %s44_s19, 1024  ;;  %p81_p9 = scmp.lt.s32.totalorder %s44_s19, %s44_s19 }
  0x15   :  { %33 = vst [vmem:[#allocation5 + $0x20] sm:$0xff] %v25_v4  ;;  %34 = vst [vmem:[#allocation5 + $0x28] sm:$0xff] %v26_v5  ;;  %v27_v6 = vld [vmem:[#allocation2 + $0x30] sm:$0xff]  ;;  %v28_v7 = vld [vmem:[#allocation2 + $0x38] sm:$0xff]  ;;  %p77_p8 = scmp.ne.s32.totalorder %s44_s19, %s76_s0  ;;  %p82_p10 = scmp.lt.s32.totalorder %s76_s0, %s76_s0 }
  0x16   :  { %35 = vst [vmem:[#allocation5 + $0x30] sm:$0xff] %v27_v6  ;;  %36 = vst [vmem:[#allocation5 + $0x38] sm:$0xff] %v28_v7 }
  0x17   :  { %p83_p11 = por %p82_p10, %p81_p9 }
  0x19   :  { %p84_p12 = pnand %p83_p11, %p77_p8 }
  0x1b   :  { %87 = shalt.err (!%p84_p12)
}
  0x1c   :  { %s88_s22 = scalar_lea.hbm %s139_s1, 1024 }
  0x1d   :  { %p89_p13 = scmp.ne.s32.totalorder %s139_s1, %s88_s22  ;;  %p92_p0 = scmp.lt.u32.totalorder %s88_s22, %s139_s1 }
  0x1f   :  { %p94_p1 = pnand %p92_p0, %p89_p13 }
  0x21   :  { %97 = shalt.err (!%p94_p1)
}
  0x22   :  { %46 = dma.vmem_to_hbm [thread:$0]  %s44_s19, 1024, %s139_s1, [#allocation4]  }
  0x23   :  { %100 = dma.done.wait [#allocation4], 1024  }
  0x24   :  { %101 = vsyncadd [#allocation4], 4294966272 }
  0x25   :  { %50 = vsyncpa [#allocation3], 1 }
  0x26   :  { %51 = vsyncpa [#allocation4], 1 }

</bundles_post_ra>
